<compile_context>
chip_gen: v5e
topology: v5e:2x2
jax: 0.10.0
libtpu: 0.0.40
codegen_flags: <defaults>
</compile_context>

<pallas_src>
import jax
import jax.numpy as jnp
from jax.experimental import pallas as pl
from jax.experimental.pallas import tpu as pltpu


def _normalize_kernel(scale_ref, bias_ref, x_ref, o_ref):
    # scale_ref / bias_ref: VMEM (row_tile, 1); x_ref / o_ref: VMEM (row_tile, lane_tile)
    o_ref[...] = (x_ref[...] * scale_ref[...] + bias_ref[...]).astype(o_ref.dtype)


def _pick_tile(dim, target, align):
    """Largest tile <= target that is a multiple of `align` and divides `dim`;
    falls back to the full extent (always a legal block dim)."""
    if dim <= target:
        return dim
    t = (target // align) * align
    while t >= align:
        if dim % t == 0:
            return t
        t -= align
    return dim


def normalize(x, sampling_box, kind="compressible"):
    """Pallas equivalent of NORMALIZE.forward: 6*(x - off)/rng - 3.

    x: (N, C, H, W) float32
    sampling_box: list of (min_val, max_val)
      - kind == 'incompressible': entry i applies to x[i]      (len == N)
      - otherwise               : entry i applies to x[:, i]   (len == C)
    """
    N, C, H, W = x.shape
    mins = jnp.asarray([mn for (mn, mx) in sampling_box], dtype=jnp.float32)
    rngs = jnp.asarray([abs(mx - mn) for (mn, mx) in sampling_box],
                       dtype=jnp.float32)
    # Fold 6*(x - off)/rng - 3 into x*scale + bias (O(K) prep, per-element FMA).
    scale_k = 6.0 / rngs
    bias_k = -6.0 * mins / rngs - 3.0

    if kind == "incompressible":
        assert len(sampling_box) == N, "sampling_box length mismatch"
        K, L = N, C * H * W
        scale_rows, bias_rows = scale_k, bias_k          # row n -> entry n
    else:
        assert len(sampling_box) == C, "sampling_box length mismatch"
        K, L = N * C, H * W
        scale_rows = jnp.tile(scale_k, N)                # row n*C + c -> entry c
        bias_rows = jnp.tile(bias_k, N)

    x2 = x.reshape(K, L)
    scale2 = scale_rows.reshape(K, 1)
    bias2 = bias_rows.reshape(K, 1)

    row_tile = _pick_tile(K, 256, 8)      # sublane-aligned (or full extent)
    lane_tile = _pick_tile(L, 2048, 128)  # lane-dense (or full extent)
    grid = (K // row_tile, L // lane_tile)

    out2 = pl.pallas_call(
        _normalize_kernel,
        out_shape=jax.ShapeDtypeStruct((K, L), x.dtype),
        grid=grid,
        in_specs=[
            pl.BlockSpec((row_tile, 1), lambda i, j: (i, 0)),          # scale
            pl.BlockSpec((row_tile, 1), lambda i, j: (i, 0)),          # bias
            pl.BlockSpec((row_tile, lane_tile), lambda i, j: (i, j)),  # x
        ],
        out_specs=pl.BlockSpec((row_tile, lane_tile), lambda i, j: (i, j)),
        compiler_params=pltpu.CompilerParams(
            dimension_semantics=("parallel", "parallel")),
        cost_estimate=pl.CostEstimate(
            flops=2 * K * L, bytes_accessed=2 * K * L * 4, transcendentals=0),
    )(scale2, bias2, x2)
    return out2.reshape(N, C, H, W)


def normalize_ref(x, sampling_box, kind="compressible"):
    """Pure-JAX reference mirroring the PyTorch loop semantics."""
    mins = jnp.asarray([mn for (mn, mx) in sampling_box], dtype=jnp.float32)
    rngs = jnp.asarray([abs(mx - mn) for (mn, mx) in sampling_box],
                       dtype=jnp.float32)
    if kind == "incompressible":
        off = mins[:, None, None, None]
        rng = rngs[:, None, None, None]
    else:
        off = mins[None, :, None, None]
        rng = rngs[None, :, None, None]
    return 6.0 * (x - off) / rng - 3.0


if __name__ == "__main__":
    key = jax.random.PRNGKey(0)
    N, C, H, W = 2, 4, 16, 16
    x = jax.random.uniform(key, (N, C, H, W), dtype=jnp.float32,
                           minval=-2.0, maxval=4.0)

    # one (min, max) pair per channel (kind != 'incompressible')
    sampling_box = [(-1.0, 1.0), (0.0, 2.0), (-2.0, 2.0), (0.5, 3.5)]

    out = jax.block_until_ready(normalize(x, sampling_box, kind="compressible"))
    ref = normalize_ref(x, sampling_box, kind="compressible")
    assert out.shape == (N, C, H, W)
    assert jnp.allclose(out, ref, atol=1e-5, rtol=1e-5), "mismatch vs reference"

    # also exercise the 'incompressible' path (sampling_box indexes dim 0)
    sampling_box_inc = [(-1.0, 1.0), (0.0, 2.0)]
    out2 = jax.block_until_ready(
        normalize(x, sampling_box_inc, kind="incompressible"))
    ref2 = normalize_ref(x, sampling_box_inc, kind="incompressible")
    assert jnp.allclose(out2, ref2, atol=1e-5, rtol=1e-5), "mismatch (incompressible)"

    print("KERNEL_OK")
</pallas_src>

<mosaic_0001>
module attributes {stable_mosaic.version = 11 : i64} {
  func.func @_normalize_kernel(%arg0: i32, %arg1: i32, %arg2: memref<8x1xf32, #tpu.memory_space<vmem>>, %arg3: memref<8x1xf32, #tpu.memory_space<vmem>>, %arg4: memref<8x256xf32, #tpu.memory_space<vmem>>, %arg5: memref<8x256xf32, #tpu.memory_space<vmem>>) attributes {dimension_semantics = [#tpu.dimension_semantics<parallel>, #tpu.dimension_semantics<parallel>], iteration_bounds = array<i64: 1, 1>, scalar_prefetch = 0 : i64, scratch_operands = 0 : i64, tpu.core_type = #tpu.core_type<tc>, window_params = [{transform_indices = @transform_0, window_bounds = array<i64: 8, 1>}, {transform_indices = @transform_1, window_bounds = array<i64: 8, 1>}, {transform_indices = @transform_2, window_bounds = array<i64: 8, 256>}, {transform_indices = @transform_3, window_bounds = array<i64: 8, 256>}]} {
    %c0 = arith.constant 0 : index
    %c0_0 = arith.constant 0 : index
    %0 = vector.load %arg4[%c0, %c0_0] : memref<8x256xf32, #tpu.memory_space<vmem>>, vector<8x256xf32>
    %c0_1 = arith.constant 0 : index
    %c0_2 = arith.constant 0 : index
    %1 = vector.load %arg2[%c0_1, %c0_2] : memref<8x1xf32, #tpu.memory_space<vmem>>, vector<8x1xf32>
    %2 = vector.broadcast %1 : vector<8x1xf32> to vector<8x256xf32>
    %3 = arith.mulf %0, %2 : vector<8x256xf32>
    %c0_3 = arith.constant 0 : index
    %c0_4 = arith.constant 0 : index
    %4 = vector.load %arg3[%c0_3, %c0_4] : memref<8x1xf32, #tpu.memory_space<vmem>>, vector<8x1xf32>
    %5 = vector.broadcast %4 : vector<8x1xf32> to vector<8x256xf32>
    %6 = arith.addf %3, %5 : vector<8x256xf32>
    %c0_5 = arith.constant 0 : index
    %c0_6 = arith.constant 0 : index
    %7 = vector.load %arg5[%c0_5, %c0_6] : memref<8x256xf32, #tpu.memory_space<vmem>>, vector<8x256xf32>
    tpu.vector_store %arg5[%c0_5, %c0_6], %6 {strides = array<i32>} : memref<8x256xf32, #tpu.memory_space<vmem>>, vector<8x256xf32>,
    return
  }
  func.func @transform_0(%arg0: i32, %arg1: i32) -> (i32, i32) {
    %c0_i32 = arith.constant 0 : i32
    %c0_i32_0 = arith.constant 0 : i32
    return %arg0, %c0_i32 : i32, i32
  }
  func.func @transform_1(%arg0: i32, %arg1: i32) -> (i32, i32) {
    %c0_i32 = arith.constant 0 : i32
    %c0_i32_0 = arith.constant 0 : i32
    return %arg0, %c0_i32 : i32, i32
  }
  func.func @transform_2(%arg0: i32, %arg1: i32) -> (i32, i32) {
    %c0_i32 = arith.constant 0 : i32
    return %arg0, %arg1 : i32, i32
  }
  func.func @transform_3(%arg0: i32, %arg1: i32) -> (i32, i32) {
    %c0_i32 = arith.constant 0 : i32
    return %arg0, %arg1 : i32, i32
  }
}

</mosaic_0001>

<bundles_post_ra>
// kernel: tpu_custom_call.1
= control target key start
LH: loop header
LB: loop body
LE: loop exit
PB: predicated region body
PF: predicated region fallthrough
CT: control target
= control target key end

     0   :  { %s117_s0 = inlined_call_operand.vmem [shape: f32[8,1], index: 0, kind: input, shape index: {}]   ;;  %s118_s1 = inlined_call_operand.vmem [shape: f32[8,1], index: 1, kind: input, shape index: {}]   ;;  %s119_s2 = inlined_call_operand.vmem [shape: f32[8,256], index: 2, kind: input, shape index: {}]   ;;  %s120_s3 = inlined_call_operand.hbm [shape: f32[8,256], index: 3, kind: output, shape index: {}]  }
   0x1   :  { %v17_v0 = vld [vmem:[%s117_s0] sm:$0xff] }
   0x2   :  { %8 = vsyncpa [#allocation3], 0  ;;  %v80_v1 = vmov 0   ;;  %v25_v2 = vld [vmem:[%s118_s1] sm:$0xff]  ;;  %v16_v5 = vld [vmem:[%s119_s2 + $0x8] sm:$0xff]  ;;  %s81_s0 = smov [#allocation2]  }
   0x3   :  { %53 = vset.pattern.permute.xlu0 %v80_v1  ;;  %v15_v4 = vld [vmem:[%s119_s2] sm:$0xff]  ;;  %s40_s20 = sshll.u32 %s81_s0, 4  ;;  %s42_s23 = sshll.u32 %s120_s3, 4  ;;  %s41_s20 = int_to_ptr.vmem [resolvable:$true] %s40_s20  ;;  %s43_s23 = int_to_ptr.hbm [resolvable:$true] %s42_s23 }
   0x4   :  { %20 = vperm.xlu0 %53, %v17_v0  }
   0xc   :  { %28 = vperm.xlu0 %53, %v25_v2  }
  0x76   :  { %v21_v3 = vpop.permute.xlu0 %20 }
  0x77   :  { %v23_v6 = vmul.f32 %v21_v3, %v15_v4  ;;  %v24_v7 = vmul.f32 %v21_v3, %v16_v5 }
  0x7e   :  { %v29_v8 = vpop.permute.xlu0 %28 }
  0x7f   :  { %v31_v9 = vadd.f32 %v29_v8, %v23_v6  ;;  %v32_v10 = vadd.f32 %v29_v8, %v24_v7 }
  0x81   :  { %33 = vst [vmem:[#allocation2] sm:$0xff] %v31_v9 }
  0x82   :  { %34 = vst [vmem:[#allocation2 + $0x8] sm:$0xff] %v32_v10 }
  0x83   :  { %45 = dma.vmem_to_hbm [thread:$0]  %s41_s20, 256, %s43_s23, [#allocation3]  }
  0x84   :  { %78 = dma.done.wait [#allocation3], 256  }
  0x85   :  { %79 = vsyncadd [#allocation3], 4294967040 }
  0x86   :  { %50 = vsyncpa [#allocation3], 1 }

</bundles_post_ra>
